<compile_context>
chip_gen: v6e
topology: v6e:2x2x1
jax: 0.10.0
libtpu: 0.0.40
codegen_flags: <defaults>
</compile_context>

<pallas_src>
import functools
import math

import jax
import jax.numpy as jnp
from jax.experimental import pallas as pl
from jax.experimental.pallas import tpu as pltpu

_LANE = 128
_SUBLANE = 8
_NEG = -1e30  # mask value for padded action logits


def _round_up(x: int, m: int) -> int:
    return ((x + m - 1) // m) * m


def policy_kernel(x_ref, w1_ref, b1_ref, w2_ref, b2_ref, out_ref):
    # x: (TB, IN), w1: (IN, Hp), b1: (1, Hp), w2: (Hp, Ap), b2: (1, Ap), out: (TB, Ap)

    # hidden = relu(x @ W1 + b1) -- native-dtype MXU matmul, f32 accumulation.
    h = jnp.dot(x_ref[...], w1_ref[...], preferred_element_type=jnp.float32)
    h = jnp.maximum(h + b1_ref[...], 0.0)                 # (TB, Hp)

    # logits = h @ W2 + b2. Padded action columns carry b2 = -1e30 so they
    # contribute exp(...) == 0 to the softmax (zero W2 columns -> h @ W2 == 0).
    logits = jnp.dot(h.astype(w2_ref.dtype), w2_ref[...],
                     preferred_element_type=jnp.float32)
    logits = logits + b2_ref[...]                         # (TB, Ap)

    # softmax along dim=1 (= last axis). Exact normalization (division) so
    # rows sum to 1 to f32 rounding, not ~1e-3.
    m = jnp.max(logits, axis=-1, keepdims=True)
    e = jnp.exp(logits - m)
    denom = jnp.sum(e, axis=-1, keepdims=True)
    out_ref[...] = (e / denom).astype(out_ref.dtype)


def prepare_params(w1, b1, w2, b2):
    """One-time parameter prep, hoisted out of the per-call forward path.

    w1: (IN, H), b1: (H,), w2: (H, A), b2: (A,) -- stored pre-transposed
    (in, out) relative to PyTorch's (out, in) Linear weights.

    Pads H and A up to multiples of 128 (lane-dense hidden activation and
    output). Padded hidden units are exact no-ops (relu(0+0)=0, zero W2 rows);
    padded action logits are masked with a -1e30 bias so the softmax over the
    real actions is unchanged.
    """
    IN, H = w1.shape
    A = w2.shape[1]
    H_pad = _round_up(max(H, _LANE), _LANE)
    A_pad = _round_up(max(A, _LANE), _LANE)

    if H_pad != H:
        w1 = jnp.pad(w1, ((0, 0), (0, H_pad - H)))
        b1 = jnp.pad(b1, (0, H_pad - H))
        w2 = jnp.pad(w2, ((0, H_pad - H), (0, 0)))
    if A_pad != A:
        w2 = jnp.pad(w2, ((0, 0), (0, A_pad - A)))
        b2 = jnp.pad(b2, (0, A_pad - A), constant_values=_NEG)

    return w1, b1.reshape(1, H_pad), w2, b2.reshape(1, A_pad), A


@functools.partial(jax.jit, static_argnames=("actions", "block_b"))
def policy_forward(x, w1, b1, w2, b2, *, actions: int, block_b: int = 1024):
    """x: (B, IN); (w1, b1, w2, b2, actions) from prepare_params()."""
    B, IN = x.shape
    H_pad = w1.shape[1]
    A_pad = w2.shape[1]

    # --- Batch tiling.
    B8 = _round_up(B, _SUBLANE)
    if B8 <= 2 * _LANE:
        TB = B8                                   # small batch: single small tile
    else:
        # TB multiple of 128, capped at block_b, and >= 2 grid blocks so the
        # "parallel" batch axis can shard across v7x's two TensorCores.
        half = _round_up(-(-B8 // 2), _LANE)
        TB = min(block_b, half)
    B_pad = _round_up(B, TB)
    if B_pad != B:
        x = jnp.pad(x, ((0, B_pad - B), (0, 0)))
    grid = (B_pad // TB,)

    # --- VMEM budget from actual footprint (weights resident + double-buffered
    # input/output tiles + f32 temporaries), 1.5x margin, capped at 48 MiB.
    wbytes = (w1.size + b1.size + w2.size + b2.size) * w1.dtype.itemsize
    xbytes = 2 * TB * IN * x.dtype.itemsize
    obytes = 2 * TB * A_pad * x.dtype.itemsize
    tbytes = TB * (H_pad + A_pad) * 4
    vmem_limit = min(48 * 1024 * 1024,
                     max(8 * 1024 * 1024,
                         int(1.5 * (wbytes + xbytes + obytes + tbytes))))

    flops = 2 * B_pad * (IN * H_pad + H_pad * A_pad)
    bytes_accessed = (B_pad * IN * x.dtype.itemsize
                      + wbytes
                      + B_pad * A_pad * x.dtype.itemsize)

    out = pl.pallas_call(
        policy_kernel,
        out_shape=jax.ShapeDtypeStruct((B_pad, A_pad), x.dtype),
        grid=grid,
        in_specs=[
            pl.BlockSpec((TB, IN), lambda i: (i, 0)),        # x: tiled over batch
            pl.BlockSpec((IN, H_pad), lambda i: (0, 0)),     # W1: VMEM-resident
            pl.BlockSpec((1, H_pad), lambda i: (0, 0)),      # b1: VMEM-resident
            pl.BlockSpec((H_pad, A_pad), lambda i: (0, 0)),  # W2: VMEM-resident
            pl.BlockSpec((1, A_pad), lambda i: (0, 0)),      # b2: VMEM-resident
        ],
        out_specs=pl.BlockSpec((TB, A_pad), lambda i: (i, 0)),
        compiler_params=pltpu.CompilerParams(
            dimension_semantics=("parallel",),
            vmem_limit_bytes=vmem_limit,
        ),
        cost_estimate=pl.CostEstimate(
            flops=flops,
            transcendentals=B_pad * A_pad,
            bytes_accessed=bytes_accessed,
        ),
    )(x, w1, b1, w2, b2)

    # Strip batch and action padding.
    return out[:B, :actions]


def reference_forward(x, w1, b1, w2, b2):
    h = jnp.maximum(x @ w1 + b1, 0.0)
    logits = h @ w2 + b2
    return jax.nn.softmax(logits, axis=1)


if __name__ == "__main__":
    # Small shapes consistent with Policy(input, hidden, actions).
    BATCH, INPUT, HIDDEN, ACTIONS = 8, 32, 64, 16

    key = jax.random.PRNGKey(0)
    kx, kw1, kb1, kw2, kb2 = jax.random.split(key, 5)

    x = jax.random.normal(kx, (BATCH, INPUT), dtype=jnp.float32)

    # PyTorch Linear weight is (out, in); stored here pre-transposed as (in, out).
    bound1 = 1.0 / math.sqrt(INPUT)
    w1 = jax.random.uniform(kw1, (INPUT, HIDDEN), jnp.float32, -bound1, bound1)
    b1 = jax.random.uniform(kb1, (HIDDEN,), jnp.float32, -bound1, bound1)

    bound2 = 1.0 / math.sqrt(HIDDEN)
    w2 = jax.random.uniform(kw2, (HIDDEN, ACTIONS), jnp.float32, -bound2, bound2)
    b2 = jax.random.uniform(kb2, (ACTIONS,), jnp.float32, -bound2, bound2)

    # One-time parameter prep (padding / bias reshapes hoisted out of the
    # per-call forward path).
    w1p, b1p, w2p, b2p, A = prepare_params(w1, b1, w2, b2)

    out = jax.block_until_ready(policy_forward(x, w1p, b1p, w2p, b2p, actions=A))
    ref = reference_forward(x, w1, b1, w2, b2)
    assert out.shape == (BATCH, ACTIONS)
    assert jnp.allclose(out, ref, atol=1e-3, rtol=1e-3), "mismatch vs reference"
    # rows of softmax must sum to 1 (exact normalization now)
    assert jnp.allclose(jnp.sum(out, axis=1), 1.0, atol=1e-5)

    # Exercise the batch-padding path (B not a multiple of 8).
    x2 = jax.random.normal(jax.random.PRNGKey(1), (10, INPUT), dtype=jnp.float32)
    out2 = jax.block_until_ready(policy_forward(x2, w1p, b1p, w2p, b2p, actions=A))
    ref2 = reference_forward(x2, w1, b1, w2, b2)
    assert out2.shape == (10, ACTIONS)
    assert jnp.allclose(out2, ref2, atol=1e-3, rtol=1e-3), "mismatch (padded batch)"
    assert jnp.allclose(jnp.sum(out2, axis=1), 1.0, atol=1e-5)

    print("KERNEL_OK")
</pallas_src>

<mosaic_0001>
module attributes {stable_mosaic.version = 11 : i64} {
  func.func @policy_kernel(%arg0: i32, %arg1: memref<8x32xf32, #tpu.memory_space<vmem>>, %arg2: memref<32x128xf32, #tpu.memory_space<vmem>>, %arg3: memref<1x128xf32, #tpu.memory_space<vmem>>, %arg4: memref<128x128xf32, #tpu.memory_space<vmem>>, %arg5: memref<1x128xf32, #tpu.memory_space<vmem>>, %arg6: memref<8x128xf32, #tpu.memory_space<vmem>>) attributes {dimension_semantics = [#tpu.dimension_semantics<parallel>], iteration_bounds = array<i64: 1>, scalar_prefetch = 0 : i64, scratch_operands = 0 : i64, tpu.core_type = #tpu.core_type<tc>, window_params = [{transform_indices = @transform_0, window_bounds = array<i64: 8, 32>}, {pipeline_mode = #tpu.pipeline_mode<synchronous>, transform_indices = @transform_1, window_bounds = array<i64: 32, 128>}, {pipeline_mode = #tpu.pipeline_mode<synchronous>, transform_indices = @transform_2, window_bounds = array<i64: 1, 128>}, {pipeline_mode = #tpu.pipeline_mode<synchronous>, transform_indices = @transform_3, window_bounds = array<i64: 128, 128>}, {pipeline_mode = #tpu.pipeline_mode<synchronous>, transform_indices = @transform_4, window_bounds = array<i64: 1, 128>}, {transform_indices = @transform_5, window_bounds = array<i64: 8, 128>}]} {
    %c0 = arith.constant 0 : index
    %c0_0 = arith.constant 0 : index
    %0 = vector.load %arg1[%c0, %c0_0] : memref<8x32xf32, #tpu.memory_space<vmem>>, vector<8x32xf32>
    %c0_1 = arith.constant 0 : index
    %c0_2 = arith.constant 0 : index
    %1 = vector.load %arg2[%c0_1, %c0_2] : memref<32x128xf32, #tpu.memory_space<vmem>>, vector<32x128xf32>
    %cst = arith.constant dense<0.000000e+00> : vector<8x128xf32>
    %2 = tpu.matmul %0, %1, %cst {dimension_numbers = #tpu.dot_dimension_numbers<[1], [0], [0], [1], [0, 0, 1, 1], [], []>} : vector<8x32xf32>, vector<32x128xf32>, vector<8x128xf32> -> vector<8x128xf32>
    %c0_3 = arith.constant 0 : index
    %c0_4 = arith.constant 0 : index
    %3 = vector.load %arg3[%c0_3, %c0_4] : memref<1x128xf32, #tpu.memory_space<vmem>>, vector<1x128xf32>
    %4 = vector.broadcast %3 : vector<1x128xf32> to vector<8x128xf32>
    %5 = arith.addf %2, %4 : vector<8x128xf32>
    %cst_5 = arith.constant 0.000000e+00 : f32
    %6 = vector.broadcast %cst_5 : f32 to vector<8x128xf32>
    %7 = arith.maximumf %5, %6 : vector<8x128xf32>
    %c0_6 = arith.constant 0 : index
    %c0_7 = arith.constant 0 : index
    %8 = vector.load %arg4[%c0_6, %c0_7] : memref<128x128xf32, #tpu.memory_space<vmem>>, vector<128x128xf32>
    %cst_8 = arith.constant dense<0.000000e+00> : vector<8x128xf32>
    %9 = tpu.matmul %7, %8, %cst_8 {dimension_numbers = #tpu.dot_dimension_numbers<[1], [0], [0], [1], [0, 0, 1, 1], [], []>} : vector<8x128xf32>, vector<128x128xf32>, vector<8x128xf32> -> vector<8x128xf32>
    %c0_9 = arith.constant 0 : index
    %c0_10 = arith.constant 0 : index
    %10 = vector.load %arg5[%c0_9, %c0_10] : memref<1x128xf32, #tpu.memory_space<vmem>>, vector<1x128xf32>
    %11 = vector.broadcast %10 : vector<1x128xf32> to vector<8x128xf32>
    %12 = arith.addf %9, %11 : vector<8x128xf32>
    %cst_11 = arith.constant dense<0xFF800000> : vector<8xf32>
    %13 = vector.multi_reduction <maximumf>, %12, %cst_11 [1] : vector<8x128xf32> to vector<8xf32>
    %14 = vector.shape_cast %13 : vector<8xf32> to vector<8x1xf32>
    %15 = vector.broadcast %14 : vector<8x1xf32> to vector<8x128xf32>
    %16 = arith.subf %12, %15 : vector<8x128xf32>
    %17 = math.exp %16 : vector<8x128xf32>
    %cst_12 = arith.constant dense<0.000000e+00> : vector<8xf32>
    %18 = vector.multi_reduction <add>, %17, %cst_12 [1] : vector<8x128xf32> to vector<8xf32>
    %19 = vector.shape_cast %18 : vector<8xf32> to vector<8x1xf32>
    %20 = vector.broadcast %19 : vector<8x1xf32> to vector<8x128xf32>
    %21 = arith.divf %17, %20 : vector<8x128xf32>
    %c0_13 = arith.constant 0 : index
    %c0_14 = arith.constant 0 : index
    %22 = vector.load %arg6[%c0_13, %c0_14] : memref<8x128xf32, #tpu.memory_space<vmem>>, vector<8x128xf32>
    tpu.vector_store %arg6[%c0_13, %c0_14], %21 {strides = array<i32>} : memref<8x128xf32, #tpu.memory_space<vmem>>, vector<8x128xf32>,
    return
  }
  func.func @transform_0(%arg0: i32) -> (i32, i32) {
    %c0_i32 = arith.constant 0 : i32
    %c0_i32_0 = arith.constant 0 : i32
    return %arg0, %c0_i32 : i32, i32
  }
  func.func @transform_1(%arg0: i32) -> (i32, i32) {
    %c0_i32 = arith.constant 0 : i32
    %c0_i32_0 = arith.constant 0 : i32
    %c0_i32_1 = arith.constant 0 : i32
    return %c0_i32, %c0_i32_0 : i32, i32
  }
  func.func @transform_2(%arg0: i32) -> (i32, i32) {
    %c0_i32 = arith.constant 0 : i32
    %c0_i32_0 = arith.constant 0 : i32
    %c0_i32_1 = arith.constant 0 : i32
    return %c0_i32, %c0_i32_0 : i32, i32
  }
  func.func @transform_3(%arg0: i32) -> (i32, i32) {
    %c0_i32 = arith.constant 0 : i32
    %c0_i32_0 = arith.constant 0 : i32
    %c0_i32_1 = arith.constant 0 : i32
    return %c0_i32, %c0_i32_0 : i32, i32
  }
  func.func @transform_4(%arg0: i32) -> (i32, i32) {
    %c0_i32 = arith.constant 0 : i32
    %c0_i32_0 = arith.constant 0 : i32
    %c0_i32_1 = arith.constant 0 : i32
    return %c0_i32, %c0_i32_0 : i32, i32
  }
  func.func @transform_5(%arg0: i32) -> (i32, i32) {
    %c0_i32 = arith.constant 0 : i32
    %c0_i32_0 = arith.constant 0 : i32
    return %arg0, %c0_i32 : i32, i32
  }
}

</mosaic_0001>

<bundles_post_ra>
// kernel: policy_forward.1
= control target key start
LH: loop header
LB: loop body
LE: loop exit
PB: predicated region body
PF: predicated region fallthrough
CT: control target
= control target key end

     0   :  { %10 = vsyncpa [#allocation3], 0  ;;  %s513_s0 = inlined_call_operand.hbm [shape: f32[8,32], index: 0, kind: input, shape index: {}]   ;;  %s514_s1 = inlined_call_operand.hbm [shape: f32[32,128], index: 1, kind: input, shape index: {}]   ;;  %s515_s2 = inlined_call_operand.vmem [shape: f32[1,128], index: 2, kind: input, shape index: {}]   ;;  %s516_s3 = inlined_call_operand.hbm [shape: f32[128,128], index: 3, kind: input, shape index: {}]   ;;  %s517_s4 = inlined_call_operand.vmem [shape: f32[1,128], index: 4, kind: input, shape index: {}]   ;;  %s518_s5 = inlined_call_operand.hbm [shape: f32[8,128], index: 5, kind: output, shape index: {}]  }
   0x1   :  { %11 = vsyncpa [#allocation6], 0 }
   0x2   :  { %12 = vsyncpa [#allocation4], 0  ;;  %s435_s18 = smov [#allocation5]  }
   0x3   :  { %s28_s19 = sshll.u32 %s435_s18, 4  ;;  %s29_s19 = int_to_ptr.vmem [resolvable:$true] %s28_s19 }
   0x4   :  { %s357_s20 = scalar_lea.vmem %s29_s19, 512  ;;  %p362_p1 = scmp.lt.s32.totalorder %s29_s19, %s29_s19 }
   0x5   :  { %p358_p0 = scmp.ne.s32.totalorder %s29_s19, %s357_s20  ;;  %p363_p2 = scmp.lt.s32.totalorder %s357_s20, %s357_s20 }
   0x7   :  { %p364_p3 = por %p363_p2, %p362_p1 }
   0x9   :  { %p365_p4 = pnand %p364_p3, %p358_p0 }
   0xb   :  { %368 = shalt.err (!%p365_p4)
}
   0xc   :  { %s436_s21 = smov 128   ;;  %s437_s22 = smov 8  }
   0xd   :  { %34 = dma.hbm_to_vmem [thread:$0]  %s514_s1, 512, %s29_s19, [#allocation6], %s436_s21, %s436_s21, %s437_s22  }
   0xe   :  { %s438_s25 = smov [#allocation2]   ;;  %s439_s27 = smov [#allocation7]  }
   0xf   :  { %s19_s26 = sshll.u32 %s438_s25, 4  ;;  %s42_s28 = sshll.u32 %s439_s27, 4  ;;  %s20_s26 = int_to_ptr.vmem [resolvable:$true] %s19_s26  ;;  %s43_s28 = int_to_ptr.vmem [resolvable:$true] %s42_s28 }
  0x10   :  { %s377_s29 = scalar_lea.vmem %s20_s26, 128  ;;  %p382_p6 = scmp.lt.s32.totalorder %s20_s26, %s20_s26 }
  0x11   :  { %p378_p5 = scmp.ne.s32.totalorder %s20_s26, %s377_s29  ;;  %p383_p7 = scmp.lt.s32.totalorder %s377_s29, %s377_s29 }
  0x13   :  { %p384_p8 = por %p383_p7, %p382_p6 }
  0x15   :  { %p385_p9 = pnand %p384_p8, %p378_p5 }
  0x17   :  { %388 = shalt.err (!%p385_p9)
}
  0x18   :  { %22 = dma.hbm_to_vmem [thread:$0]  %s513_s0, 128, %s20_s26, [#allocation3]  }
  0x19   :  { %s397_s7 = scalar_lea.vmem %s43_s28, 2048  ;;  %p402_p11 = scmp.lt.s32.totalorder %s43_s28, %s43_s28 }
  0x1a   :  { %p398_p10 = scmp.ne.s32.totalorder %s43_s28, %s397_s7  ;;  %p403_p12 = scmp.lt.s32.totalorder %s397_s7, %s397_s7 }
  0x1c   :  { %p404_p13 = por %p403_p12, %p402_p11 }
  0x1e   :  { %p405_p0 = pnand %p404_p13, %p398_p10 }
  0x20   :  { %408 = shalt.err (!%p405_p0)
}
  0x21   :  { %48 = dma.hbm_to_vmem [thread:$0]  %s516_s3, 2048, %s43_s28, [#allocation6], %s436_s21, %s436_s21, %s437_s22  }
  0x22   :  { %429 = dma.done.wait [#allocation3], 128  }
  0x23   :  { %430 = vsyncadd [#allocation3], 4294967168 }
  0x24   :  { %431 = dma.done.wait [#allocation6], 2560  }
  0x25   :  { %432 = vsyncadd [#allocation6], 4294964736  ;;  %v440_v0 = vmov 0.0   ;;  %vm441_vm0 = vmmov 0   ;;  %v64_v1 = vld [vmem:[#allocation5 + $0x18] sm:$0xff]  ;;  %v63_v2 = vld [vmem:[#allocation5 + $0x10] sm:$0xff] }
  0x26   :  { %291 = vmatprep.subr.mxu0 %v440_v0  ;;  %299 = vmatprep.mubr.msk.f32.mxu0 %vm441_vm0, %v440_v0  ;;  %v162_v3 = vld [vmem:[#allocation7 + $0x78] sm:$0xff]  ;;  %v62_v4 = vld [vmem:[#allocation5 + $0x8] sm:$0xff]  ;;  %v161_v5 = vld [vmem:[#allocation7 + $0x70] sm:$0xff]  ;;  %vm72_vm1 = vcmask 261120  }
  0x27   :  { %302 = vmatprep.subr.mxu1 %v440_v0  ;;  %334 = vmatprep.mubr.msk.f32.mxu1 %vm441_vm0, %v440_v0  ;;  %v160_v6 = vld [vmem:[#allocation7 + $0x68] sm:$0xff]  ;;  %v61_v7 = vld [vmem:[#allocation5] sm:$0xff]  ;;  %v60_v8 = vld [vmem:[#allocation2] sm:$0xff] }
  0x28   :  { %292 = vmatpush3.msra.mxu0 %v64_v1  ;;  %303 = vmatpush3.msra.mxu1 %v162_v3  ;;  %v159_v9 = vld [vmem:[#allocation7 + $0x60] sm:$0xff]  ;;  %v158_v10 = vld [vmem:[#allocation7 + $0x58] sm:$0xff]  ;;  %v157_v11 = vld [vmem:[#allocation7 + $0x50] sm:$0xff] }
  0x29   :  { %293 = vmatprep.subr.mxu0 %v440_v0  ;;  %304 = vmatprep.subr.mxu1 %v440_v0  ;;  %v156_v12 = vld [vmem:[#allocation7 + $0x48] sm:$0xff]  ;;  %v155_v13 = vld [vmem:[#allocation7 + $0x40] sm:$0xff]  ;;  %v154_v14 = vld [vmem:[#allocation7 + $0x38] sm:$0xff] }
  0x2a   :  { %294 = vmatpush3.msra.mxu0 %v63_v2  ;;  %305 = vmatpush3.msra.mxu1 %v161_v5  ;;  %v153_v15 = vld [vmem:[#allocation7 + $0x30] sm:$0xff]  ;;  %v152_v16 = vld [vmem:[#allocation7 + $0x28] sm:$0xff]  ;;  %v151_v17 = vld [vmem:[#allocation7 + $0x20] sm:$0xff] }
  0x2b   :  { %295 = vmatprep.subr.mxu0 %v440_v0  ;;  %306 = vmatprep.subr.mxu1 %v440_v0  ;;  %v150_v18 = vld [vmem:[#allocation7 + $0x18] sm:$0xff]  ;;  %v149_v19 = vld [vmem:[#allocation7 + $0x10] sm:$0xff]  ;;  %v148_v20 = vld [vmem:[#allocation7 + $0x8] sm:$0xff] }
  0x2c   :  { %296 = vmatpush3.msra.mxu0 %v62_v4  ;;  %307 = vmatpush3.msra.mxu1 %v160_v6  ;;  %v147_v21 = vld [vmem:[#allocation7] sm:$0xff]  ;;  %v266_v22 = vld [vmem:[%s515_s2] ss:$0 sm:$0xff]  ;;  %s442_s2 = smov [#allocation8]  }
  0x2d   :  { %297 = vmatprep.subr.mxu0 %v440_v0  ;;  %308 = vmatprep.subr.mxu1 %v440_v0  ;;  %v268_v27 = vld [vmem:[%s517_s4] ss:$0 sm:$0xff]  ;;  %s256_s11 = sshll.u32 %s442_s2, 4  ;;  %s257_s11 = int_to_ptr.vmem [resolvable:$true] %s256_s11 }
  0x2e   :  { %298 = vmatpush3.msra.mxu0 %v61_v7  ;;  %309 = vmatpush3.msra.mxu1 %v159_v9  ;;  %s409_s12 = scalar_lea.vmem %s257_s11, 128  ;;  %p414_p2 = scmp.lt.s32.totalorder %s257_s11, %s257_s11 }
  0x2f   :  { %300 = vmatmul.mubr.msk.f32.vlgmr.msra.gmra.mxu0 %vm72_vm1, %v60_v8  ;;  %310 = vmatprep.subr.mxu1 %v440_v0  ;;  %p410_p1 = scmp.ne.s32.totalorder %s257_s11, %s409_s12  ;;  %p415_p3 = scmp.lt.s32.totalorder %s409_s12, %s409_s12 }
  0x30   :  { %311 = vmatpush3.msra.mxu1 %v158_v10 }
  0x31   :  { %312 = vmatprep.subr.mxu1 %v440_v0  ;;  %p416_p4 = por %p415_p3, %p414_p2 }
  0x32   :  { %313 = vmatpush3.msra.mxu1 %v157_v11 }
  0x33   :  { %314 = vmatprep.subr.mxu1 %v440_v0  ;;  %p417_p5 = pnand %p416_p4, %p410_p1 }
  0x34   :  { %315 = vmatpush3.msra.mxu1 %v156_v12 }
  0x35   :  { %316 = vmatprep.subr.mxu1 %v440_v0 }
  0x36   :  { %317 = vmatpush3.msra.mxu1 %v155_v13 }
  0x37   :  { %318 = vmatprep.subr.mxu1 %v440_v0 }
  0x38   :  { %319 = vmatpush3.msra.mxu1 %v154_v14 }
  0x39   :  { %320 = vmatprep.subr.mxu1 %v440_v0 }
  0x3a   :  { %321 = vmatpush3.msra.mxu1 %v153_v15 }
  0x3b   :  { %322 = vmatprep.subr.mxu1 %v440_v0 }
  0x3c   :  { %323 = vmatpush3.msra.mxu1 %v152_v16 }
  0x3d   :  { %324 = vmatprep.subr.mxu1 %v440_v0 }
  0x3e   :  { %325 = vmatpush3.msra.mxu1 %v151_v17 }
  0x3f   :  { %326 = vmatprep.subr.mxu1 %v440_v0 }
  0x40   :  { %327 = vmatpush3.msra.mxu1 %v150_v18 }
  0x41   :  { %328 = vmatprep.subr.mxu1 %v440_v0 }
  0x42   :  { %329 = vmatpush3.msra.mxu1 %v149_v19 }
  0x43   :  { %330 = vmatprep.subr.mxu1 %v440_v0 }
  0x44   :  { %331 = vmatpush3.msra.mxu1 %v148_v20 }
  0x45   :  { %332 = vmatprep.subr.mxu1 %v440_v0 }
  0x46   :  { %333 = vmatpush3.msra.mxu1 %v147_v21 }
  0xef   :  { %v142_v23 = vpop.f32.mrf.mxu0 }
  0xf0   :  { %v143_v24 = vadd.f32 %v266_v22, %v142_v23 }
  0xf1   :  { %v301_v25 = vpop.f32.mrf.mxu0 }
  0xf2   :  { %v146_v26 = vmax.f32 %v143_v24, 0.0 }
  0xf4   :  { %335 = vmatmul.mubr.f32.vlgmr.msra.gmra.mxu1 %v146_v26 }
 0x1b4   :  { %v236_v28 = vpop.f32.mrf.mxu1 }
 0x1b5   :  { %v237_v29 = vadd.f32 %v268_v27, %v236_v28 }
 0x1b6   :  { %v336_v30 = vpop.f32.mrf.mxu1 }
 0x1b7   :  { %240 = vmax.xlane.f32.xlu0 %v237_v29 }
 0x240   :  { %v241_v31 = vpop.xlane.xlu0 %240 }
 0x241   :  { %v242_v32 = vsub.f32 %v237_v29, %v241_v31 }
 0x243   :  { %v243_v33 = vmul.f32 1.442695, %v242_v32 }
 0x245   :  { %345 = vpow2.f32 %v243_v33 }
 0x252   :  { %v346_v34 = vpop.eup %345 }
 0x253   :  { %245 = vadd.xlane.f32.xlu0 %v346_v34 }
 0x2dc   :  { %v246_v35 = vpop.xlane.xlu0 %245 }
 0x2dd   :  { %347 = vrcp.f32 %v246_v35 }
 0x2ea   :  { %v348_v36 = vpop.eup %347 }
 0x2eb   :  { %v248_v37 = vmul.f32 %v348_v36, %v346_v34 }
 0x2ed   :  { %249 = vst [vmem:[#allocation8] sm:$0xff] %v248_v37 }
 0x2ee   :  { %420 = shalt.err (!%p417_p5)
}
 0x2ef   :  { %259 = dma.vmem_to_hbm [thread:$0]  %s257_s11, 128, %s518_s5, [#allocation4]  }
 0x2f0   :  { %433 = dma.done.wait [#allocation4], 128  }
 0x2f1   :  { %434 = vsyncadd [#allocation4], 4294967168 }
 0x2f2   :  { %263 = vsyncpa [#allocation3], 1 }
 0x2f3   :  { %264 = vsyncpa [#allocation6], 1 }
 0x2f4   :  { %265 = vsyncpa [#allocation4], 1 }

</bundles_post_ra>
